<compile_context>
chip_gen: v5e
topology: v5e:2x2
jax: 0.10.0
libtpu: 0.0.40
codegen_flags: <defaults>
</compile_context>

<pallas_src>
import functools

import jax
import jax.numpy as jnp
from jax.experimental import pallas as pl
from jax.experimental.pallas import tpu as pltpu  # noqa: F401  (TPU backend)

# Full-f32 matmuls for both the reference and the in-kernel dots, so the
# comparison is not dominated by low-precision MXU passes amplified by the
# eps=0 batch norm.
jax.config.update("jax_default_matmul_precision", "highest")


def _activation(name, x):
    if name == "sigmoid":
        return 1.0 / (1.0 + jnp.exp(-x))
    if name == "relu":
        return jnp.maximum(x, 0.0)
    if name == "leakyrelu":
        return jnp.where(x >= 0.0, x, 0.01 * x)
    if name == "tanh":
        return jnp.tanh(x)
    raise ValueError(f"unknown activation: {name}")


def _finish(h, wl, bl, o_ref):
    """Final Linear(H,1) + tanh*3 + BatchNorm1d(1, eps=0); batch on lanes."""
    # Linear(H, 1) as VPU multiply + sublane reduce (no 1-wide MXU matmul).
    z = jnp.sum(h * wl, axis=0, keepdims=True) + bl           # (1, B) lane-dense
    y = jnp.tanh(z) * 3.0                                      # (1, B)
    # BatchNorm1d(1, eps=0, momentum=0, affine=False), training mode:
    # batch statistics, biased variance, eps = 0.
    mean = jnp.mean(y, axis=1, keepdims=True)                  # lane reduce (XLU)
    diff = y - mean
    var = jnp.mean(diff * diff, axis=1, keepdims=True)
    o_ref[...] = diff * jax.lax.rsqrt(var)                     # lane-dense store
    # TODO(synk): BatchNorm1d's running_mean/running_var buffer updates are not
    # produced (they do not affect the training-mode forward output).


def _personnet_kernel_depth1(x_ref, w1_ref, b1_ref, wl_ref, bl_ref, o_ref,
                             *, activation):
    xT = x_ref[...]                                            # (N, B)
    h = _activation(
        activation,
        jnp.dot(w1_ref[...], xT, preferred_element_type=jnp.float32)
        + b1_ref[...])                                         # (H, B)
    _finish(h, wl_ref[...], bl_ref[...], o_ref)


def _personnet_kernel_depth3(x_ref, w1_ref, b1_ref, w2_ref, b2_ref,
                             w3_ref, b3_ref, wl_ref, bl_ref, o_ref,
                             *, activation):
    xT = x_ref[...]                                            # (N, B)
    h = _activation(
        activation,
        jnp.dot(w1_ref[...], xT, preferred_element_type=jnp.float32)
        + b1_ref[...])                                         # (H, B)
    h = _activation(
        activation,
        jnp.dot(w2_ref[...], h, preferred_element_type=jnp.float32)
        + b2_ref[...])                                         # (2H, B)
    h = _activation(
        activation,
        jnp.dot(w3_ref[...], h, preferred_element_type=jnp.float32)
        + b3_ref[...])                                         # (H, B)
    _finish(h, wl_ref[...], bl_ref[...], o_ref)


def init_personnet_params(key, num_items, hidden_dim, depth=1):
    """PyTorch-style uniform(+-1/sqrt(fan_in)) init.

    fc weights kept in PyTorch (out_features, in_features) layout, biases as
    (out_features, 1) columns, so the kernel can keep the batch on the lane
    axis.  The last Linear's weight is stored as a (hidden_dim, 1) column."""
    def linear(k, fan_in, fan_out):
        kw, kb = jax.random.split(k)
        bound = 1.0 / (fan_in ** 0.5)
        w = jax.random.uniform(kw, (fan_out, fan_in), jnp.float32, -bound, bound)
        b = jax.random.uniform(kb, (fan_out, 1), jnp.float32, -bound, bound)
        return w, b

    keys = jax.random.split(key, 4)
    params = {}
    params["w1"], params["b1"] = linear(keys[0], num_items, hidden_dim)
    if depth == 3:
        params["w2"], params["b2"] = linear(keys[1], hidden_dim, hidden_dim * 2)
        params["w3"], params["b3"] = linear(keys[2], hidden_dim * 2, hidden_dim)
    w_last, b_last = linear(keys[3], hidden_dim, 1)             # (1,H), (1,1)
    params["wl"] = w_last.T                                     # (H, 1)
    params["bl"] = b_last                                       # (1, 1)
    return params


def personnet_forward(x, params, *, depth=1, activation="sigmoid"):
    B = x.shape[0]
    xT = jnp.transpose(x)          # batch on the lane axis inside the kernel

    if depth == 1:
        kernel = functools.partial(_personnet_kernel_depth1,
                                   activation=activation)
        args = (xT, params["w1"], params["b1"], params["wl"], params["bl"])
    elif depth == 3:
        kernel = functools.partial(_personnet_kernel_depth3,
                                   activation=activation)
        args = (xT, params["w1"], params["b1"], params["w2"], params["b2"],
                params["w3"], params["b3"], params["wl"], params["bl"])
    else:
        raise ValueError("depth must be 1 or 3")

    full = lambda a: pl.BlockSpec(a.shape, lambda: (0,) * a.ndim)

    # Whole problem fits comfortably in VMEM -> single invocation, no grid.
    # TODO(synk): for large B, tile the batch over a grid with running
    # sum / sum-of-squares accumulators (two-pass BatchNorm) so the batch
    # statistics stay exact across tiles.
    out_row = pl.pallas_call(
        kernel,
        out_shape=jax.ShapeDtypeStruct((1, B), jnp.float32),
        grid=(),
        in_specs=[full(a) for a in args],
        out_specs=pl.BlockSpec((1, B), lambda: (0, 0)),
    )(*args)

    return out_row.reshape(B, 1)   # back to PyTorch's (B, 1) layout


def personnet_reference(x, params, *, depth=1, activation="sigmoid"):
    """Plain-XLA reference in PyTorch orientation; returns (out, pre-norm y)."""
    h = _activation(activation, x @ params["w1"].T + params["b1"].T)
    if depth == 3:
        h = _activation(activation, h @ params["w2"].T + params["b2"].T)
        h = _activation(activation, h @ params["w3"].T + params["b3"].T)
    y = jnp.tanh(h @ params["wl"] + params["bl"]) * 3.0
    mean = jnp.mean(y, axis=0, keepdims=True)
    var = jnp.mean((y - mean) ** 2, axis=0, keepdims=True)
    return (y - mean) / jnp.sqrt(var), y


def _check(name, out, ref, y_ref, batch):
    assert out.shape == (batch, 1), (name, out.shape)
    assert bool(jnp.all(jnp.isfinite(out))), name
    # eps=0 BatchNorm divides by std(y): f32/transcendental rounding noise in y
    # (budget ~5e-5 abs) between the kernel and the XLA reference is amplified
    # by 1/std(y), so the tolerance must scale with the conditioning.
    y_std = float(jnp.std(y_ref))
    atol = 1e-3 + 5e-5 / max(y_std, 1e-6)
    err = float(jnp.max(jnp.abs(out - ref)))
    assert err <= atol, f"{name}: max|kernel-ref|={err:.3e} > atol={atol:.3e}"
    # The output must be exactly batch-normalised (mean ~0, biased var ~1).
    assert abs(float(jnp.mean(out))) < 1e-2, name
    assert abs(float(jnp.var(out)) - 1.0) < 1e-2, name


if __name__ == "__main__":
    key = jax.random.PRNGKey(0)
    k_x, k_p1, k_p3 = jax.random.split(key, 3)

    B, num_items, hidden_dim = 8, 16, 32
    x = jax.random.normal(k_x, (B, num_items), jnp.float32)

    params1 = init_personnet_params(k_p1, num_items, hidden_dim, depth=1)
    params3 = init_personnet_params(k_p3, num_items, hidden_dim, depth=3)

    cases = [
        ("depth=1/sigmoid", params1, 1, "sigmoid"),   # module defaults
        ("depth=3/sigmoid", params3, 3, "sigmoid"),   # ill-conditioned case
        ("depth=3/relu", params3, 3, "relu"),         # other activation branch
    ]
    for name, params, depth, act in cases:
        out = jax.block_until_ready(
            personnet_forward(x, params, depth=depth, activation=act))
        ref, y_ref = personnet_reference(x, params, depth=depth, activation=act)
        _check(name, out, ref, y_ref, B)

    print("KERNEL_OK")
</pallas_src>

<mosaic_0001>
module attributes {stable_mosaic.version = 11 : i64} {
  func.func @_personnet_kernel_depth1(%arg0: memref<16x8xf32, #tpu.memory_space<vmem>>, %arg1: memref<32x16xf32, #tpu.memory_space<vmem>>, %arg2: memref<32x1xf32, #tpu.memory_space<vmem>>, %arg3: memref<32x1xf32, #tpu.memory_space<vmem>>, %arg4: memref<1x1xf32, #tpu.memory_space<vmem>>, %arg5: memref<1x8xf32, #tpu.memory_space<vmem>>) attributes {dimension_semantics = [], scalar_prefetch = 0 : i64, scratch_operands = 0 : i64, tpu.core_type = #tpu.core_type<tc>} {
    %c0 = arith.constant 0 : index
    %c0_0 = arith.constant 0 : index
    %0 = vector.load %arg0[%c0, %c0_0] : memref<16x8xf32, #tpu.memory_space<vmem>>, vector<16x8xf32>
    %c0_1 = arith.constant 0 : index
    %c0_2 = arith.constant 0 : index
    %1 = vector.load %arg1[%c0_1, %c0_2] : memref<32x16xf32, #tpu.memory_space<vmem>>, vector<32x16xf32>
    %cst = arith.constant dense<0.000000e+00> : vector<32x8xf32>
    %2 = tpu.matmul %1, %0, %cst {dimension_numbers = #tpu.dot_dimension_numbers<[1], [0], [0], [1], [0, 0, 1, 1], [], []>, precision = #tpu.contract_precision<fp32>} : vector<32x16xf32>, vector<16x8xf32>, vector<32x8xf32> -> vector<32x8xf32>
    %c0_3 = arith.constant 0 : index
    %c0_4 = arith.constant 0 : index
    %3 = vector.load %arg2[%c0_3, %c0_4] : memref<32x1xf32, #tpu.memory_space<vmem>>, vector<32x1xf32>
    %4 = vector.broadcast %3 : vector<32x1xf32> to vector<32x8xf32>
    %5 = arith.addf %2, %4 : vector<32x8xf32>
    %cst_5 = arith.constant 0.000000e+00 : f32
    %6 = vector.broadcast %cst_5 : f32 to vector<32x8xf32>
    %7 = arith.subf %6, %5 : vector<32x8xf32>
    %8 = math.exp %7 : vector<32x8xf32>
    %cst_6 = arith.constant 1.000000e+00 : f32
    %9 = vector.broadcast %cst_6 : f32 to vector<32x8xf32>
    %10 = arith.addf %9, %8 : vector<32x8xf32>
    %cst_7 = arith.constant 1.000000e+00 : f32
    %11 = vector.broadcast %cst_7 : f32 to vector<32x8xf32>
    %12 = arith.divf %11, %10 : vector<32x8xf32>
    %c0_8 = arith.constant 0 : index
    %c0_9 = arith.constant 0 : index
    %13 = vector.load %arg3[%c0_8, %c0_9] : memref<32x1xf32, #tpu.memory_space<vmem>>, vector<32x1xf32>
    %c0_10 = arith.constant 0 : index
    %c0_11 = arith.constant 0 : index
    %14 = vector.load %arg4[%c0_10, %c0_11] : memref<1x1xf32, #tpu.memory_space<vmem>>, vector<1x1xf32>
    %15 = vector.broadcast %13 : vector<32x1xf32> to vector<32x8xf32>
    %16 = arith.mulf %12, %15 : vector<32x8xf32>
    %cst_12 = arith.constant dense<0.000000e+00> : vector<8xf32>
    %17 = vector.multi_reduction <add>, %16, %cst_12 [0] : vector<32x8xf32> to vector<8xf32>
    %18 = vector.shape_cast %17 : vector<8xf32> to vector<1x8xf32>
    %19 = vector.broadcast %14 : vector<1x1xf32> to vector<1x8xf32>
    %20 = arith.addf %18, %19 : vector<1x8xf32>
    %21 = math.tanh %20 : vector<1x8xf32>
    %cst_13 = arith.constant 3.000000e+00 : f32
    %22 = vector.broadcast %cst_13 : f32 to vector<1x8xf32>
    %23 = arith.mulf %21, %22 : vector<1x8xf32>
    %cst_14 = arith.constant dense<0.000000e+00> : vector<1xf32>
    %24 = vector.multi_reduction <add>, %23, %cst_14 [1] : vector<1x8xf32> to vector<1xf32>
    %25 = vector.shape_cast %24 : vector<1xf32> to vector<1x1xf32>
    %cst_15 = arith.constant 8.000000e+00 : f32
    %26 = vector.broadcast %cst_15 : f32 to vector<1x1xf32>
    %27 = arith.divf %25, %26 : vector<1x1xf32>
    %28 = vector.broadcast %27 : vector<1x1xf32> to vector<1x8xf32>
    %29 = arith.subf %23, %28 : vector<1x8xf32>
    %30 = arith.mulf %29, %29 : vector<1x8xf32>
    %cst_16 = arith.constant dense<0.000000e+00> : vector<1xf32>
    %31 = vector.multi_reduction <add>, %30, %cst_16 [1] : vector<1x8xf32> to vector<1xf32>
    %32 = vector.shape_cast %31 : vector<1xf32> to vector<1x1xf32>
    %cst_17 = arith.constant 8.000000e+00 : f32
    %33 = vector.broadcast %cst_17 : f32 to vector<1x1xf32>
    %34 = arith.divf %32, %33 : vector<1x1xf32>
    %35 = math.rsqrt %34 : vector<1x1xf32>
    %36 = vector.broadcast %35 : vector<1x1xf32> to vector<1x8xf32>
    %37 = arith.mulf %29, %36 : vector<1x8xf32>
    %c0_18 = arith.constant 0 : index
    %c0_19 = arith.constant 0 : index
    %38 = vector.load %arg5[%c0_18, %c0_19] : memref<1x8xf32, #tpu.memory_space<vmem>>, vector<1x8xf32>
    tpu.vector_store %arg5[%c0_18, %c0_19], %37 {strides = array<i32>} : memref<1x8xf32, #tpu.memory_space<vmem>>, vector<1x8xf32>,
    return
  }
}

</mosaic_0001>

<bundles_post_ra>
// kernel: tpu_custom_call.1
= control target key start
LH: loop header
LB: loop body
LE: loop exit
PB: predicated region body
PF: predicated region fallthrough
CT: control target
= control target key end

     0   :  { %s696_s0 = inlined_call_operand.vmem [shape: f32[16,8], index: 0, kind: input, shape index: {}]   ;;  %s697_s1 = inlined_call_operand.vmem [shape: f32[32,16], index: 1, kind: input, shape index: {}]   ;;  %s698_s2 = inlined_call_operand.vmem [shape: f32[32,1], index: 2, kind: input, shape index: {}]   ;;  %s699_s3 = inlined_call_operand.vmem [shape: f32[32,1], index: 3, kind: input, shape index: {}]   ;;  %s700_s4 = inlined_call_operand.<no memory space> [shape: f32[1,1], index: 4, kind: input, shape index: {}]   ;;  %s701_s5 = inlined_call_operand.hbm [shape: f32[1,8], index: 5, kind: output, shape index: {}]  }
   0x1   :  { %v10_v0 = vstv %s700_s4 }
   0x2   :  { %11 = vst [vmem:[#allocation2] sm:$0x1] %v10_v0 }
   0x3   :  { %v24_v1 = vld [vmem:[%s696_s0 + $0x8] sm:$0xff]  ;;  %v23_v2 = vld [vmem:[%s696_s0] sm:$0xff]  ;;  %v27_v3 = vld [vmem:[%s697_s1 + $0x10] sm:$0xff]  ;;  %vm53_vm0 = vcmask 130048   ;;  %v550_v9 = vmov 0  }
   0x4   :  { %v595_v4 = vand.u32 4294901760, %v24_v1  ;;  %v597_v5 = vand.u32 4294901760, %v23_v2  ;;  %v61_v6 = vsel %vm53_vm0, %v27_v3, 0  ;;  %v28_v7 = vld [vmem:[%s697_s1 + $0x18] sm:$0xff]  ;;  %v25_v8 = vld [vmem:[%s697_s1] sm:$0xff]  ;;  %500 = vset.pattern.permute.xlu1 %v550_v9  ;;  %v31_v10 = vld [vmem:[%s698_s2 + $0x10] sm:$0xff]  ;;  %499 = vset.pattern.permute.xlu0 %v550_v9 }
   0x5   :  { %v609_v11 = vand.u32 4294901760, %v61_v6  ;;  %v64_v12 = vsel %vm53_vm0, %v28_v7, 0  ;;  %v55_v13 = vsel %vm53_vm0, %v25_v8, 0  ;;  %45 = vperm.xlu1 %500, %v31_v10   ;;  %v26_v14 = vld [vmem:[%s697_s1 + $0x8] sm:$0xff]  ;;  %v29_v15 = vld [vmem:[%s698_s2] sm:$0xff]  ;;  %501 = vset.pattern.permute.xlu2 %v550_v9 }
   0x6   :  { %492 = vmatpush.msra.mxu2 %v595_v4  ;;  %v132_v16 = vsub.f32 %v24_v1, %v595_v4  ;;  %v138_v17 = vsub.f32 %v23_v2, %v597_v5  ;;  %81 = vmatpush.msra.mxu0 %v595_v4  ;;  %v623_v18 = vand.u32 4294901760, %v64_v12  ;;  %v84_v19 = vand.u32 4294901760, %v55_v13 }
   0x7   :  { %12 = vsyncpa [#allocation4], 0  ;;  %v626_v20 = vsub.f32 %v61_v6, %v609_v11  ;;  %v58_v21 = vsel %vm53_vm0, %v26_v14, 0  ;;  %35 = vperm.xlu0 %499, %v29_v15   ;;  %v32_v31 = vld [vmem:[%s698_s2 + $0x18] sm:$0xff]  ;;  %v30_v38 = vld [vmem:[%s698_s2 + $0x8] sm:$0xff]  ;;  %vm423_vm14 = vcmask 64512  }
   0x8   :  { %493 = vmatpush.msra.mxu2 %v597_v5  ;;  %v133_v22 = vand.u32 4294901760, %v132_v16  ;;  %v139_v23 = vand.u32 4294901760, %v138_v17  ;;  %v631_v24 = vsub.f32 %v64_v12, %v623_v18  ;;  %83 = vmatpush.msra.mxu0 %v597_v5  ;;  %v85_v25 = vsub.f32 %v55_v13, %v84_v19  ;;  %v396_v46 = vld [vmem:[%s699_s3 + $0x10] sm:$0xff]  ;;  %v397_v47 = vld [vmem:[%s699_s3 + $0x18] sm:$0xff]  ;;  %v394_v48 = vld [vmem:[%s699_s3] sm:$0xff]  ;;  %s483_s22 = sshll.u32 %s701_s5, 4  ;;  %s484_s22 = int_to_ptr.hbm [resolvable:$true] %s483_s22 }
   0x9   :  { %v102_v26 = vand.u32 4294901760, %v626_v20  ;;  %v92_v27 = vand.u32 4294901760, %v58_v21  ;;  %401 = vperm.xlu2 %501, %v394_v48   ;;  %v395_v49 = vld [vmem:[%s699_s3 + $0x8] sm:$0xff]  ;;  %v398_v50 = vld [vmem:[#allocation2] sm:$0x1]  ;;  %s552_s3 = smov [#allocation3]  }
   0xa   :  { %176 = vmatpush.msrb.mxu2 %v132_v16  ;;  %v134_v28 = vsub.f32 %v132_v16, %v133_v22  ;;  %v140_v29 = vsub.f32 %v138_v17, %v139_v23  ;;  %v86_v30 = vand.u32 4294901760, %v85_v25  ;;  %261 = vmatpush.msrb.mxu0 %v133_v22  ;;  %v110_v33 = vand.u32 4294901760, %v631_v24  ;;  %s481_s19 = sshll.u32 %s552_s3, 4  ;;  %s482_s19 = int_to_ptr.vmem [resolvable:$true] %s481_s19 }
   0xb   :  { %v103_v32 = vsub.f32 %v626_v20, %v102_v26  ;;  %v93_v34 = vsub.f32 %v58_v21, %v92_v27 }
   0xc   :  { %179 = vmatpush.msrb.mxu2 %v138_v17  ;;  %v135_v35 = vand.u32 4294901760, %v134_v28  ;;  %v141_v36 = vand.u32 4294901760, %v140_v29  ;;  %v87_v37 = vsub.f32 %v85_v25, %v86_v30  ;;  %265 = vmatpush.msrb.mxu0 %v139_v23  ;;  %v111_v42 = vsub.f32 %v631_v24, %v110_v33 }
   0xd   :  { %v104_v39 = vand.u32 4294901760, %v103_v32  ;;  %v94_v40 = vand.u32 4294901760, %v93_v34  ;;  %50 = vperm.xlu1 %500, %v32_v31  }
   0xe   :  { %494 = vmatpush.msra.mxu3 %v135_v35  ;;  %136 = vmatpush.msra.mxu1 %v135_v35  ;;  %v88_v41 = vand.u32 4294901760, %v87_v37  ;;  %v112_v44 = vand.u32 4294901760, %v111_v42 }
   0xf   :  { %105 = vmatmul.f32.vlgmr.msra.gmra.mxu2 %v104_v39  ;;  %40 = vperm.xlu0 %499, %v30_v38   ;;  %v95_v43 = vsub.f32 %v93_v34, %v94_v40 }
  0x10   :  { %495 = vmatpush.msra.mxu3 %v141_v36  ;;  %89 = vmatmul.f32.vlgmr.msra.gmra.mxu0 %v88_v41 }
  0x11   :  { %152 = vmatmul.f32.vlgmr.msra.gmra.mxu3 %v609_v11  ;;  %142 = vmatpush.msra.mxu1 %v141_v36  ;;  %v96_v45 = vand.u32 4294901760, %v95_v43 }
  0x12   :  { %216 = vmatpush.msrb.mxu3 %v595_v4  ;;  %144 = vmatmul.f32.vlgmr.msra.gmra.mxu1 %v84_v19 }
  0x13   :  { %298 = vmatpush.msrb.mxu1 %v595_v4  ;;  %406 = vperm.xlu2 %501, %v395_v49  }
  0x14   :  { %218 = vmatpush.msrb.mxu3 %v597_v5 }
  0x15   :  { %300 = vmatpush.msrb.mxu1 %v597_v5  ;;  %416 = vperm.xlu1 %500, %v397_v47  }
  0x17   :  { %113 = vmatmul.f32.gmra.mxu2 %v112_v44  ;;  %411 = vperm.xlu0 %499, %v396_v46  }
  0x18   :  { %97 = vmatmul.f32.gmra.mxu0 %v96_v45 }
  0x19   :  { %156 = vmatmul.f32.gmra.mxu3 %v623_v18 }
  0x1a   :  { %148 = vmatmul.f32.gmra.mxu1 %v92_v27 }
  0x1b   :  { %439 = vperm.xlu2 %501, %v398_v50  }
  0x1f   :  { %182 = vmatmul.f32.vlgmr.msrb.gmra.mxu2 %v85_v25 }
  0x20   :  { %267 = vmatmul.f32.vlgmr.msrb.gmra.mxu0 %v84_v19 }
  0x21   :  { %222 = vmatmul.f32.vlgmr.msrb.gmra.mxu3 %v86_v30 }
  0x22   :  { %302 = vmatmul.f32.vlgmr.msrb.gmra.mxu1 %v84_v19 }
  0x27   :  { %187 = vmatmul.f32.gmra.mxu2 %v93_v34 }
  0x28   :  { %271 = vmatmul.f32.gmra.mxu0 %v92_v27 }
  0x29   :  { %228 = vmatmul.f32.gmra.mxu3 %v94_v40 }
  0x2a   :  { %306 = vmatmul.f32.gmra.mxu1 %v92_v27 }
  0x2f   :  { %192 = vmatmul.f32.gmra.mxu2 %v626_v20 }
  0x30   :  { %275 = vmatmul.f32.gmra.mxu0 %v609_v11 }
  0x31   :  { %234 = vmatmul.f32.gmra.mxu3 %v102_v26 }
  0x32   :  { %310 = vmatmul.f32.gmra.mxu1 %v609_v11 }
  0x37   :  { %197 = vmatmul.f32.gmra.mxu2 %v631_v24 }
  0x38   :  { %279 = vmatmul.f32.gmra.mxu0 %v623_v18 }
  0x39   :  { %240 = vmatmul.f32.gmra.mxu3 %v110_v33 }
  0x3a   :  { %314 = vmatmul.f32.gmra.mxu1 %v623_v18 }
  0x77   :  { %v46_v6 = vpop.permute.xlu1 %45 }
  0x79   :  { %v36_v57 = vpop.permute.xlu0 %35 }
  0x7f   :  { %v51_v21 = vpop.permute.xlu1 %50 }
  0x81   :  { %v41_v0 = vpop.permute.xlu0 %40 }
  0x8d   :  { %v90_v51 = vpop.f32.mrf.mxu0 }
  0x8e   :  { %v91_v60 = vadd.f32 %v90_v51, %v36_v57 }
  0x8f   :  { %v145_v52 = vpop.f32.mrf.mxu1 }
  0x90   :  { %v146_v63 = vadd.f32 %v145_v52, %v91_v60 }
  0x92   :  { %v106_v53 = vpop.f32.mrf.mxu2 }
  0x93   :  { %v107_v16 = vadd.f32 %v106_v53, %v46_v6 }
  0x94   :  { %v153_v54 = vpop.f32.mrf.mxu3 }
  0x95   :  { %v98_v55 = vpop.f32.mrf.mxu0  ;;  %v154_v20 = vadd.f32 %v153_v54, %v107_v16 }
  0x96   :  { %v99_v4 = vadd.f32 %v98_v55, %v41_v0  ;;  %v402_v0 = vpop.permute.xlu2 %401 }
  0x97   :  { %v149_v56 = vpop.f32.mrf.mxu1 }
  0x98   :  { %v150_v9 = vadd.f32 %v149_v56, %v99_v4 }
  0x9a   :  { %v114_v58 = vpop.f32.mrf.mxu2 }
  0x9b   :  { %v115_v30 = vadd.f32 %v114_v58, %v51_v21 }
  0x9c   :  { %v157_v59 = vpop.f32.mrf.mxu3 }
  0x9d   :  { %v268_v61 = vpop.f32.mrf.mxu0  ;;  %v158_v35 = vadd.f32 %v157_v59, %v115_v30 }
  0x9f   :  { %v303_v62 = vpop.f32.mrf.mxu1 }
  0xa2   :  { %v183_v1 = vpop.f32.mrf.mxu2 }
  0xa3   :  { %v184_v2 = vadd.f32 %v183_v1, %v146_v63 }
  0xa4   :  { %v223_v3 = vpop.f32.mrf.mxu3 }
  0xa5   :  { %v224_v5 = vadd.f32 %v223_v3, %v184_v2  ;;  %v272_v8 = vpop.f32.mrf.mxu0 }
  0xa7   :  { %v269_v7 = vadd.f32 %v268_v61, %v224_v5  ;;  %v307_v12 = vpop.f32.mrf.mxu1 }
  0xa9   :  { %v304_v10 = vadd.f32 %v303_v62, %v269_v7 }
  0xaa   :  { %v188_v11 = vpop.f32.mrf.mxu2 }
  0xab   :  { %v318_v13 = vsub.f32 0.0, %v304_v10  ;;  %v189_v14 = vadd.f32 %v188_v11, %v150_v9 }
  0xac   :  { %v229_v15 = vpop.f32.mrf.mxu3 }
  0xad   :  { %v322_v17 = vmul.f32 1.442695, %v318_v13  ;;  %v230_v18 = vadd.f32 %v229_v15, %v189_v14  ;;  %v276_v24 = vpop.f32.mrf.mxu0 }
  0xaf   :  { %502 = vpow2.f32 %v322_v17  ;;  %v273_v19 = vadd.f32 %v272_v8, %v230_v18  ;;  %v311_v28 = vpop.f32.mrf.mxu1 }
  0xb1   :  { %v308_v22 = vadd.f32 %v307_v12, %v273_v19 }
  0xb2   :  { %v193_v23 = vpop.f32.mrf.mxu2 }
  0xb3   :  { %v319_v25 = vsub.f32 0.0, %v308_v22  ;;  %v194_v26 = vadd.f32 %v193_v23, %v154_v20 }
  0xb4   :  { %v235_v27 = vpop.f32.mrf.mxu3 }
  0xb5   :  { %v503_v29 = vpop.eup %502  ;;  %v324_v31 = vmul.f32 1.442695, %v319_v25  ;;  %v236_v32 = vadd.f32 %v235_v27, %v194_v26  ;;  %v280_v41 = vpop.f32.mrf.mxu0 }
  0xb6   :  { %v668_v33 = vadd.f32 1.0, %v503_v29  ;;  %v407_v25 = vpop.permute.xlu2 %406  ;;  %v412_v29 = vpop.permute.xlu0 %411 }
  0xb7   :  { %504 = vpow2.f32 %v324_v31  ;;  %v277_v34 = vadd.f32 %v276_v24, %v236_v32  ;;  %v315_v46 = vpop.f32.mrf.mxu1 }
  0xb8   :  { %506 = vrcp.f32 %v668_v33  ;;  %v345_v6 = vand.u32 2147483648, %v668_v33  ;;  %vm339_vm4 = vweird.f32 %v668_v33  ;;  %v343_v8 = vand.u32 2147483647, %v668_v33 }
  0xb9   :  { %v312_v36 = vadd.f32 %v311_v28, %v277_v34 }
  0xba   :  { %v198_v37 = vpop.f32.mrf.mxu2  ;;  %v346_v17 = vor.u32 1.1754944e-38, %v345_v6  ;;  %vm344_vm10 = vcmp.eq.f32.partialorder %v343_v8, 8.507059e+37 }
  0xbb   :  { %v320_v38 = vsub.f32 0.0, %v312_v36  ;;  %v199_v39 = vadd.f32 %v198_v37, %v158_v35 }
  0xbc   :  { %v241_v40 = vpop.f32.mrf.mxu3 }
  0xbd   :  { %v505_v42 = vpop.eup %504  ;;  %v326_v43 = vmul.f32 1.442695, %v320_v38  ;;  %v242_v44 = vadd.f32 %v241_v40, %v199_v39 }
  0xbe   :  { %v331_v45 = vadd.f32 1.0, %v505_v42  ;;  %v507_v48 = vpop.eup %506 }
  0xbf   :  { %508 = vpow2.f32 %v326_v43  ;;  %v281_v47 = vadd.f32 %v280_v41, %v242_v44  ;;  %v335_v51 = vmul.f32 %v507_v48, %v668_v33  ;;  %vm340_vm2 = vweird.f32 %v507_v48  ;;  %v417_v41 = vpop.permute.xlu1 %416 }
  0xc0   :  { %510 = vrcp.f32 %v331_v45  ;;  %v360_v4 = vand.u32 2147483648, %v331_v45  ;;  %vm354_vm3 = vweird.f32 %v331_v45  ;;  %v358_v7 = vand.u32 2147483647, %v331_v45  ;;  %vm679_vm6 = vmor %vm339_vm4, %vm340_vm2 }
  0xc1   :  { %v316_v49 = vadd.f32 %v315_v46, %v281_v47  ;;  %v336_v57 = vsub.f32 1.0, %v335_v51 }
  0xc2   :  { %v361_v16 = vor.u32 1.1754944e-38, %v360_v4  ;;  %vm359_vm8 = vcmp.eq.f32.partialorder %v358_v7, 8.507059e+37 }
  0xc3   :  { %v321_v50 = vsub.f32 0.0, %v316_v49  ;;  %v337_v60 = vmul.f32 %v507_v48, %v336_v57 }
  0xc5   :  { %v509_v52 = vpop.eup %508  ;;  %v328_v53 = vmul.f32 1.442695, %v321_v50  ;;  %v338_v3 = vadd.f32 %v507_v48, %v337_v60  ;;  %v551_v60 = vmov 8.0  }
  0xc6   :  { %v511_v54 = vpop.eup %510  ;;  %v332_v55 = vadd.f32 1.0, %v509_v52  ;;  %v440_v52 = vpop.permute.xlu2 %439 }
  0xc7   :  { %512 = vpow2.f32 %v328_v53  ;;  %v350_v56 = vmul.f32 %v511_v54, %v331_v45  ;;  %vm355_vm1 = vweird.f32 %v511_v54  ;;  %v342_v15 = vsel %vm679_vm6, %v507_v48, %v338_v3 }
  0xc8   :  { %514 = vrcp.f32 %v332_v55  ;;  %vm675_vm5 = vmor %vm354_vm3, %vm355_vm1  ;;  %v375_v10 = vand.u32 2147483648, %v332_v55  ;;  %v373_v14 = vand.u32 2147483647, %v332_v55  ;;  %vm369_vm9 = vweird.f32 %v332_v55 }
  0xc9   :  { %v351_v58 = vsub.f32 1.0, %v350_v56  ;;  %v347_v23 = vsel %vm344_vm10, %v346_v17, %v342_v15  ;;  %vm474_vm6 = vcmask 57344  }
  0xca   :  { %v376_v21 = vor.u32 1.1754944e-38, %v375_v10  ;;  %vm374_vm12 = vcmp.eq.f32.partialorder %v373_v14, 8.507059e+37  ;;  %v419_v31 = vmul.f32 %v402_v0, %v347_v23 }
  0xcb   :  { %v352_v59 = vmul.f32 %v511_v54, %v351_v58 }
  0xcc   :  { %v424_v38 = vsel %vm423_vm14, %v419_v31, 0.0 }
  0xcd   :  { %v513_v61 = vpop.eup %512  ;;  %v353_v2 = vadd.f32 %v511_v54, %v352_v59 }
  0xce   :  { %v515_v62 = vpop.eup %514  ;;  %v333_v63 = vadd.f32 1.0, %v513_v61 }
  0xcf   :  { %v365_v1 = vmul.f32 %v515_v62, %v332_v55  ;;  %v357_v12 = vsel %vm675_vm5, %v511_v54, %v353_v2  ;;  %vm370_vm7 = vweird.f32 %v515_v62  ;;  %v442_v55 = vperm.slane %v440_v52, 0 }
  0xd0   :  { %516 = vrcp.f32 %v333_v63  ;;  %v362_v20 = vsel %vm359_vm8, %v361_v16, %v357_v12  ;;  %vm371_vm11 = vmor %vm369_vm9, %vm370_vm7  ;;  %v390_v30 = vand.u32 2147483648, %v333_v63  ;;  %v388_v33 = vand.u32 2147483647, %v333_v63 }
  0xd1   :  { %v366_v5 = vsub.f32 1.0, %v365_v1  ;;  %v420_v28 = vmul.f32 %v407_v25, %v362_v20  ;;  %vm384_vm15 = vweird.f32 %v333_v63 }
  0xd2   :  { %v391_v37 = vor.u32 1.1754944e-38, %v390_v30  ;;  %vm389_vm1 = vcmp.eq.f32.partialorder %v388_v33, 8.507059e+37 }
  0xd3   :  { %v367_v13 = vmul.f32 %v515_v62, %v366_v5  ;;  %v425_v36 = vsel %vm423_vm14, %v420_v28, 0.0 }
  0xd4   :  { %v426_v43 = vadd.f32 %v425_v36, %v424_v38 }
  0xd5   :  { %v368_v18 = vadd.f32 %v515_v62, %v367_v13 }
  0xd6   :  { %v517_v19 = vpop.eup %516 }
  0xd7   :  { %v380_v22 = vmul.f32 %v517_v19, %v333_v63  ;;  %v372_v24 = vsel %vm371_vm11, %v515_v62, %v368_v18  ;;  %vm385_vm13 = vweird.f32 %v517_v19 }
  0xd8   :  { %v377_v26 = vsel %vm374_vm12, %v376_v21, %v372_v24  ;;  %vm386_vm0 = vmor %vm384_vm15, %vm385_vm13 }
  0xd9   :  { %v381_v27 = vsub.f32 1.0, %v380_v22  ;;  %v421_v34 = vmul.f32 %v412_v29, %v377_v26 }
  0xdb   :  { %v382_v32 = vmul.f32 %v517_v19, %v381_v27  ;;  %v427_v40 = vsel %vm423_vm14, %v421_v34, 0.0 }
  0xdc   :  { %v428_v45 = vadd.f32 %v427_v40, %v426_v43 }
  0xdd   :  { %v383_v35 = vadd.f32 %v517_v19, %v382_v32 }
  0xdf   :  { %v387_v39 = vsel %vm386_vm0, %v517_v19, %v383_v35 }
  0xe0   :  { %v392_v42 = vsel %vm389_vm1, %v391_v37, %v387_v39 }
  0xe1   :  { %v422_v44 = vmul.f32 %v417_v41, %v392_v42 }
  0xe3   :  { %v429_v46 = vsel %vm423_vm14, %v422_v44, 0.0 }
  0xe4   :  { %v430_v47 = vadd.f32 %v429_v46, %v428_v45 }
  0xe6   :  { %v431_v48 = vrot.slane %v430_v47, 4 }
  0xe8   :  { %v432_v49 = vadd.f32 %v431_v48, %v430_v47 }
  0xea   :  { %v433_v50 = vrot.slane %v432_v49, 2 }
  0xec   :  { %v434_v51 = vadd.f32 %v433_v50, %v432_v49 }
  0xee   :  { %v435_v53 = vrot.slane %v434_v51, 1 }
  0xf0   :  { %v436_v54 = vadd.f32 %v435_v53, %v434_v51 }
  0xf2   :  { %v443_v56 = vadd.f32 %v442_v55, %v436_v54 }
  0xf4   :  { %518 = vtanh.f32 %v443_v56 }
  0xf5   :  { %520 = vrcp.f32 %v551_v60 }
  0xfa   :  { %v519_v57 = vpop.eup %518 }
  0xfb   :  { %v445_v58 = vmul.f32 3.0, %v519_v57  ;;  %v521_v61 = vpop.eup %520 }
  0xfc   :  { %v450_v62 = vmul.f32 8.0, %v521_v61  ;;  %vm454_vm2 = vweird.f32 %v521_v61 }
  0xfd   :  { %v446_v59 = vsel %vm423_vm14, %v445_v58, 0.0 }
  0xfe   :  { %447 = vadd.xlane.f32.xlu0 %v446_v59  ;;  %v451_v63 = vsub.f32 1.0, %v450_v62 }
 0x100   :  { %v452_v0 = vmul.f32 %v521_v61, %v451_v63 }
 0x102   :  { %v453_v1 = vadd.f32 %v521_v61, %v452_v0 }
 0x104   :  { %v455_v2 = vsel %vm454_vm2, %v521_v61, %v453_v1 }
 0x171   :  { %v448_v3 = vpop.xlane.xlu0 %447 }
 0x172   :  { %v456_v4 = vmul.f32 %v455_v2, %v448_v3 }
 0x174   :  { %v457_v5 = vsub.f32 %v445_v58, %v456_v4 }
 0x176   :  { %v458_v6 = vmul.f32 %v457_v5, %v457_v5 }
 0x178   :  { %v459_v7 = vsel %vm423_vm14, %v458_v6, 0.0 }
 0x179   :  { %460 = vadd.xlane.f32.xlu1 %v459_v7 }
 0x1ec   :  { %v461_v8 = vpop.xlane.xlu1 %460 }
 0x1ed   :  { %v462_v9 = vmul.f32 %v461_v8, %v455_v2 }
 0x1ef   :  { %522 = vrsqrt.f32 %v462_v9  ;;  %vm469_vm4 = vweird.f32 %v462_v9 }
 0x1f5   :  { %v523_v10 = vpop.eup %522 }
 0x1f6   :  { %v464_v11 = vmul.f32 %v523_v10, %v462_v9  ;;  %vm470_vm3 = vweird.f32 %v523_v10 }
 0x1f7   :  { %vm471_vm5 = vmor %vm469_vm4, %vm470_vm3 }
 0x1f8   :  { %v465_v12 = vmul.f32 %v523_v10, %v464_v11 }
 0x1fa   :  { %v466_v13 = vmul.f32 0.5, %v465_v12 }
 0x1fc   :  { %v467_v14 = vsub.f32 1.5, %v466_v13 }
 0x1fe   :  { %v468_v15 = vmul.f32 %v523_v10, %v467_v14 }
 0x200   :  { %v472_v16 = vsel %vm471_vm5, %v523_v10, %v468_v15 }
 0x201   :  { %v473_v17 = vmul.f32 %v472_v16, %v457_v5 }
 0x203   :  { %475 = vst.msk [vmem:[#allocation3] sm:$0x1] %vm474_vm6, %v473_v17 }
 0x204   :  { %486 = dma.vmem_to_hbm [thread:$0]  %s482_s19, 16, %s484_s22, [#allocation4]  }
 0x205   :  { %548 = dma.done.wait [#allocation4], 16  }
 0x206   :  { %549 = vsyncadd [#allocation4], 4294967280 }
 0x207   :  { %491 = vsyncpa [#allocation4], 1 }

</bundles_post_ra>
